<compile_context>
chip_gen: v5e
topology: v5e:2x2
jax: 0.10.0
libtpu: 0.0.40
codegen_flags: <defaults>
</compile_context>

<pallas_src>
import functools

import jax
import jax.numpy as jnp
import numpy as np
from jax.experimental import pallas as pl
from jax.experimental.pallas import tpu as pltpu


def _softmax_last(x, approx):
    m = jnp.max(x, axis=-1, keepdims=True)
    e = jnp.exp(x - m)
    return e * pl.reciprocal(jnp.sum(e, axis=-1, keepdims=True), approx=approx)


def poly_encoder_kernel(poly_ref, qout_ref, resp_ref, out_ref, *, approx_recip):
    """Batched PolyEncoder core for Bb batch elements per grid step.

    poly_ref : (M, H)      poly code embeddings (shared across the batch)
    qout_ref : (Bb, L, H)  query encoder output block
    resp_ref : (Bb, C, H)  response CLS vector block
    out_ref  : (Bb, C)     similarity scores block (lane-dense slab)
    """
    poly = poly_ref[...]          # (M, H), native dtype
    qout = qout_ref[...]          # (Bb, L, H)
    resp = resp_ref[...]          # (Bb, C, H)
    in_dtype = qout.dtype
    bb = qout.shape[0]

    # --- attention 1: query_vec = dot_attention(poly, qout, qout) -----------
    poly_b = jnp.broadcast_to(poly[None], (bb,) + poly.shape)   # (Bb, M, H)
    s1 = jnp.einsum("bmh,blh->bml", poly_b, qout,
                    preferred_element_type=jnp.float32)          # (Bb, M, L) f32
    p1 = _softmax_last(s1, approx_recip)
    query_vec = jnp.einsum("bml,blh->bmh", p1.astype(in_dtype), qout,
                           preferred_element_type=jnp.float32)   # (Bb, M, H) f32

    # --- attention 2 + similarity, value-matmul eliminated -------------------
    s2 = jnp.einsum("bch,bmh->bcm", resp, query_vec.astype(in_dtype),
                    preferred_element_type=jnp.float32)          # (Bb, C, M) f32
    p2 = _softmax_last(s2, approx_recip)

    # out[b,c] = sum_h (p2 @ qv)[b,c,h] * resp[b,c,h] = sum_m p2[b,c,m]*s2[b,c,m]
    out_ref[...] = jnp.sum(p2 * s2, axis=-1).astype(out_ref.dtype)  # (Bb, C)


def _choose_block_batch(B, L, C, M, H, itemsize, budget_bytes):
    """Pick Bb: biggest block-batch that fits the VMEM budget, divides B,
    and keeps >= 2 grid steps (v7x dual-TensorCore sharding)."""
    per_b = (2 * (L + C) * H * itemsize                       # 2x-buffered inputs
             + 4 * (2 * M * L + M * H + 2 * C * M + C))       # f32 intermediates
    bb = max(1, budget_bytes // max(per_b, 1))
    if B >= 2:
        bb = min(bb, B // 2)      # keep grid length >= 2 for the two v7x TCs
    bb = int(max(1, min(bb, B)))
    while B % bb:                 # must divide B evenly
        bb -= 1
    return bb


def poly_encoder_core(poly_codes, query_out, response_vec, compute_dtype=None,
                      vmem_budget_bytes=24 * 1024 * 1024):
    """poly_codes: (M, H); query_out: (B, L, H); response_vec: (B, C, H)."""
    if compute_dtype is not None:
        poly_codes = poly_codes.astype(compute_dtype)
        query_out = query_out.astype(compute_dtype)
        response_vec = response_vec.astype(compute_dtype)

    M, H = poly_codes.shape
    B, L, _ = query_out.shape
    _, C, _ = response_vec.shape
    itemsize = jnp.dtype(query_out.dtype).itemsize

    bb = _choose_block_batch(B, L, C, M, H, itemsize, vmem_budget_bytes)
    grid_b = B // bb

    # Exact reciprocal for f32 parity; EUP approx reciprocal on low-precision.
    approx_recip = itemsize < 4

    # Explicit scoped-VMEM limit (v5e default is 16 MiB; v7x physical is 64 MiB).
    blk_bytes = 2 * bb * (L + C) * H * itemsize
    poly_bytes = 2 * M * H * itemsize
    interm_bytes = 4 * bb * (2 * M * L + M * H + 2 * C * M + C) + 2 * bb * C * 4
    vmem_limit = int(min(max(2 * (blk_bytes + poly_bytes + interm_bytes),
                             32 << 20), 48 << 20))

    cost = pl.CostEstimate(
        flops=B * (4 * M * L * H + 2 * C * M * H + 2 * C * M),
        transcendentals=B * (M * L + C * M),
        bytes_accessed=(M * H + B * L * H + B * C * H) * itemsize + B * C * 4,
    )

    kernel = functools.partial(poly_encoder_kernel, approx_recip=approx_recip)

    out = pl.pallas_call(
        kernel,
        # 3-D out_shape keeps the block's last two dims equal to the full
        # array dims (always layout-legal); wrapper reshapes to (B, C).
        out_shape=jax.ShapeDtypeStruct((grid_b, bb, C), jnp.float32),
        grid=(grid_b,),
        in_specs=[
            # poly table: identical block for every grid step (fetched once).
            pl.BlockSpec((M, H), lambda b: (0, 0)),
            # Bb-batched per-step blocks.
            pl.BlockSpec((bb, L, H), lambda b: (b, 0, 0)),
            pl.BlockSpec((bb, C, H), lambda b: (b, 0, 0)),
        ],
        out_specs=pl.BlockSpec((None, bb, C), lambda b: (b, 0, 0)),
        compiler_params=pltpu.CompilerParams(
            dimension_semantics=("parallel",),
            vmem_limit_bytes=vmem_limit,
        ),
        cost_estimate=cost,
    )(poly_codes, query_out, response_vec)
    return out.reshape(B, C)


# ---------------- plain-JAX glue (encoder stand-in + param setup) -----------

def toy_encoder(token_emb, input_ids, input_masks):
    """Deterministic stand-in for the BERT encoder.

    Returns (B, L, H): embedding lookup scaled by the attention mask.
    """
    out = token_emb[input_ids]                       # (B, L, H)
    return out * input_masks[..., None].astype(out.dtype)


def poly_encoder_forward(params, query_input_ids, query_input_masks,
                         responses_input_ids, responses_input_masks,
                         compute_dtype=None):
    token_emb = params["token_emb"]                  # (V, H)
    poly_emb = params["poly_code_embeddings"]        # (poly_m, H)

    batch_size, cnt, seq_length = responses_input_ids.shape
    poly_m, hidden = poly_emb.shape

    # query encoder output: B * len * hidden
    query_out = toy_encoder(token_emb, query_input_ids, query_input_masks)

    # poly codes: arange(poly_m) -> embedding (kept as (M, H); shared in-kernel)
    poly_code_ids = jnp.arange(poly_m, dtype=jnp.int32)
    poly_codes = poly_emb[poly_code_ids]                         # (M, H)

    # response encoder: flatten (B*cnt, len), take CLS token, reshape back
    resp_ids = responses_input_ids.reshape(batch_size * cnt, seq_length)
    resp_masks = responses_input_masks.reshape(batch_size * cnt, seq_length)
    response_out = toy_encoder(token_emb, resp_ids, resp_masks)[:, 0, :]
    response_vec = response_out.reshape(batch_size, cnt, hidden)

    # hot path in Pallas
    return poly_encoder_core(poly_codes, query_out, response_vec,
                             compute_dtype=compute_dtype)


def poly_encoder_reference(params, q_ids, q_masks, r_ids, r_masks):
    """Pure-JAX reference mirroring the PyTorch forward (sim='normal')."""
    token_emb = params["token_emb"]
    poly_emb = params["poly_code_embeddings"]
    B, C, L = r_ids.shape
    M, H = poly_emb.shape

    def dot_attention(q, k, v):
        w = jnp.einsum("bqh,bkh->bqk", q, k)
        w = jax.nn.softmax(w, axis=-1)
        return jnp.einsum("bqk,bkh->bqh", w, v)

    query_out = toy_encoder(token_emb, q_ids, q_masks)
    poly_codes = jnp.broadcast_to(poly_emb[None], (B, M, H))
    query_vec = dot_attention(poly_codes, query_out, query_out)
    resp_out = toy_encoder(token_emb, r_ids.reshape(B * C, L),
                           r_masks.reshape(B * C, L))[:, 0, :]
    response_vec = resp_out.reshape(B, C, H)
    ctx_emb = dot_attention(response_vec, query_vec, query_vec)
    return jnp.sum(ctx_emb * response_vec, axis=-1)


if __name__ == "__main__":
    # Small, forward-consistent shapes.
    B, cnt, L = 2, 4, 8
    hidden, poly_m, vocab = 32, 4, 64

    key = jax.random.PRNGKey(0)
    k_tok, k_poly, k_qid, k_rid = jax.random.split(key, 4)

    # Deterministic parameter init (shapes per module __init__).
    # poly_code_embeddings: normal_(weight, hidden ** -0.5) -> mean=H^-0.5, std=1
    params = {
        "token_emb": (jax.random.normal(k_tok, (vocab, hidden), jnp.float32)
                      * 0.02),
        "poly_code_embeddings": (
            jax.random.normal(k_poly, (poly_m, hidden), jnp.float32)
            + hidden ** (-0.5)),
    }

    query_input_ids = jax.random.randint(k_qid, (B, L), 0, vocab, jnp.int32)
    query_input_masks = jnp.ones((B, L), jnp.float32)
    responses_input_ids = jax.random.randint(k_rid, (B, cnt, L), 0, vocab,
                                             jnp.int32)
    responses_input_masks = jnp.ones((B, cnt, L), jnp.float32)

    ref = poly_encoder_reference(params, query_input_ids, query_input_masks,
                                 responses_input_ids, responses_input_masks)

    # f32 path: exact parity with the pure-JAX reference.
    out_f32 = poly_encoder_forward(params, query_input_ids, query_input_masks,
                                   responses_input_ids, responses_input_masks)
    out_f32 = jax.block_until_ready(out_f32)
    np.testing.assert_allclose(np.asarray(out_f32), np.asarray(ref),
                               rtol=1e-5, atol=1e-5)
    assert out_f32.shape == (B, cnt)

    # bf16 MXU path (recommended on v5e/v6e/v7x): score-level tolerance only.
    out_bf16 = poly_encoder_forward(params, query_input_ids, query_input_masks,
                                    responses_input_ids, responses_input_masks,
                                    compute_dtype=jnp.bfloat16)
    out_bf16 = jax.block_until_ready(out_bf16)
    np.testing.assert_allclose(np.asarray(out_bf16), np.asarray(ref),
                               rtol=5e-2, atol=1e-3)

    print("KERNEL_OK")
</pallas_src>

<mosaic_0001>
module attributes {stable_mosaic.version = 11 : i64} {
  func.func @poly_encoder_kernel(%arg0: i32, %arg1: memref<4x32xf32, #tpu.memory_space<vmem>>, %arg2: memref<1x8x32xf32, #tpu.memory_space<vmem>>, %arg3: memref<1x4x32xf32, #tpu.memory_space<vmem>>, %arg4: memref<1x1x4xf32, #tpu.memory_space<vmem>>) attributes {dimension_semantics = [#tpu.dimension_semantics<parallel>], iteration_bounds = array<i64: 2>, scalar_prefetch = 0 : i64, scratch_operands = 0 : i64, tpu.core_type = #tpu.core_type<tc>, window_params = [{pipeline_mode = #tpu.pipeline_mode<synchronous>, transform_indices = @transform_0, window_bounds = array<i64: 4, 32>}, {transform_indices = @transform_1, window_bounds = array<i64: 1, 8, 32>}, {transform_indices = @transform_2, window_bounds = array<i64: 1, 4, 32>}, {transform_indices = @transform_3, window_bounds = array<i64: 1, 1, 4>}]} {
    %c0 = arith.constant 0 : index
    %c0_0 = arith.constant 0 : index
    %0 = vector.load %arg1[%c0, %c0_0] : memref<4x32xf32, #tpu.memory_space<vmem>>, vector<4x32xf32>
    %c0_1 = arith.constant 0 : index
    %c0_2 = arith.constant 0 : index
    %c0_3 = arith.constant 0 : index
    %1 = vector.load %arg2[%c0_1, %c0_2, %c0_3] : memref<1x8x32xf32, #tpu.memory_space<vmem>>, vector<1x8x32xf32>
    %c0_4 = arith.constant 0 : index
    %c0_5 = arith.constant 0 : index
    %c0_6 = arith.constant 0 : index
    %2 = vector.load %arg3[%c0_4, %c0_5, %c0_6] : memref<1x4x32xf32, #tpu.memory_space<vmem>>, vector<1x4x32xf32>
    %3 = vector.shape_cast %0 : vector<4x32xf32> to vector<1x4x32xf32>
    "tpu.trace_start"() <{level = 10 : i32, message = "bmh,blh->bml"}> : () -> ()
    %cst = arith.constant dense<0.000000e+00> : vector<1x4x8xf32>
    %4 = tpu.matmul %3, %1, %cst {dimension_numbers = #tpu.dot_dimension_numbers<[2], [2], [1], [1], [0, 0, 0, 1, 1, 1], [0], [0]>} : vector<1x4x32xf32>, vector<1x8x32xf32>, vector<1x4x8xf32> -> vector<1x4x8xf32>
    "tpu.trace_stop"() : () -> ()
    %cst_7 = arith.constant dense<0xFF800000> : vector<1x4xf32>
    %5 = vector.multi_reduction <maximumf>, %4, %cst_7 [2] : vector<1x4x8xf32> to vector<1x4xf32>
    %6 = vector.shape_cast %5 : vector<1x4xf32> to vector<1x4x1xf32>
    %7 = vector.broadcast %6 : vector<1x4x1xf32> to vector<1x4x8xf32>
    %8 = arith.subf %4, %7 : vector<1x4x8xf32>
    %9 = math.exp %8 : vector<1x4x8xf32>
    %cst_8 = arith.constant dense<0.000000e+00> : vector<1x4xf32>
    %10 = vector.multi_reduction <add>, %9, %cst_8 [2] : vector<1x4x8xf32> to vector<1x4xf32>
    %11 = vector.shape_cast %10 : vector<1x4xf32> to vector<1x4x1xf32>
    %12 = tpu.reciprocal %11 : vector<1x4x1xf32> -> vector<1x4x1xf32>
    %13 = vector.broadcast %12 : vector<1x4x1xf32> to vector<1x4x8xf32>
    %14 = arith.mulf %9, %13 : vector<1x4x8xf32>
    "tpu.trace_start"() <{level = 10 : i32, message = "bml,blh->bmh"}> : () -> ()
    %cst_9 = arith.constant dense<0.000000e+00> : vector<1x4x32xf32>
    %15 = tpu.matmul %14, %1, %cst_9 {dimension_numbers = #tpu.dot_dimension_numbers<[2], [1], [1], [2], [0, 0, 0, 1, 1, 2], [0], [0]>} : vector<1x4x8xf32>, vector<1x8x32xf32>, vector<1x4x32xf32> -> vector<1x4x32xf32>
    "tpu.trace_stop"() : () -> ()
    "tpu.trace_start"() <{level = 10 : i32, message = "bch,bmh->bcm"}> : () -> ()
    %cst_10 = arith.constant dense<0.000000e+00> : vector<1x4x4xf32>
    %16 = tpu.matmul %2, %15, %cst_10 {dimension_numbers = #tpu.dot_dimension_numbers<[2], [2], [1], [1], [0, 0, 0, 1, 1, 1], [0], [0]>} : vector<1x4x32xf32>, vector<1x4x32xf32>, vector<1x4x4xf32> -> vector<1x4x4xf32>
    "tpu.trace_stop"() : () -> ()
    %cst_11 = arith.constant dense<0xFF800000> : vector<1x4xf32>
    %17 = vector.multi_reduction <maximumf>, %16, %cst_11 [2] : vector<1x4x4xf32> to vector<1x4xf32>
    %18 = vector.shape_cast %17 : vector<1x4xf32> to vector<1x4x1xf32>
    %19 = vector.broadcast %18 : vector<1x4x1xf32> to vector<1x4x4xf32>
    %20 = arith.subf %16, %19 : vector<1x4x4xf32>
    %21 = math.exp %20 : vector<1x4x4xf32>
    %cst_12 = arith.constant dense<0.000000e+00> : vector<1x4xf32>
    %22 = vector.multi_reduction <add>, %21, %cst_12 [2] : vector<1x4x4xf32> to vector<1x4xf32>
    %23 = vector.shape_cast %22 : vector<1x4xf32> to vector<1x4x1xf32>
    %24 = tpu.reciprocal %23 : vector<1x4x1xf32> -> vector<1x4x1xf32>
    %25 = vector.broadcast %24 : vector<1x4x1xf32> to vector<1x4x4xf32>
    %26 = arith.mulf %21, %25 : vector<1x4x4xf32>
    %27 = arith.mulf %26, %16 : vector<1x4x4xf32>
    %cst_13 = arith.constant dense<0.000000e+00> : vector<1x4xf32>
    %28 = vector.multi_reduction <add>, %27, %cst_13 [2] : vector<1x4x4xf32> to vector<1x4xf32>
    %c0_14 = arith.constant 0 : index
    %c0_15 = arith.constant 0 : index
    %c0_16 = arith.constant 0 : index
    %29 = vector.load %arg4[%c0_14, %c0_15, %c0_16] : memref<1x1x4xf32, #tpu.memory_space<vmem>>, vector<1x1x4xf32>
    %30 = vector.shape_cast %29 : vector<1x1x4xf32> to vector<1x4xf32>
    %31 = vector.shape_cast %28 : vector<1x4xf32> to vector<1x1x4xf32>
    tpu.vector_store %arg4[%c0_14, %c0_15, %c0_16], %31 {strides = array<i32>} : memref<1x1x4xf32, #tpu.memory_space<vmem>>, vector<1x1x4xf32>,
    return
  }
  func.func @transform_0(%arg0: i32) -> (i32, i32) {
    %c0_i32 = arith.constant 0 : i32
    %c0_i32_0 = arith.constant 0 : i32
    %c0_i32_1 = arith.constant 0 : i32
    return %c0_i32, %c0_i32_0 : i32, i32
  }
  func.func @transform_1(%arg0: i32) -> (i32, i32, i32) {
    %c0_i32 = arith.constant 0 : i32
    %c0_i32_0 = arith.constant 0 : i32
    %c0_i32_1 = arith.constant 0 : i32
    return %arg0, %c0_i32, %c0_i32_0 : i32, i32, i32
  }
  func.func @transform_2(%arg0: i32) -> (i32, i32, i32) {
    %c0_i32 = arith.constant 0 : i32
    %c0_i32_0 = arith.constant 0 : i32
    %c0_i32_1 = arith.constant 0 : i32
    return %arg0, %c0_i32, %c0_i32_0 : i32, i32, i32
  }
  func.func @transform_3(%arg0: i32) -> (i32, i32, i32) {
    %c0_i32 = arith.constant 0 : i32
    %c0_i32_0 = arith.constant 0 : i32
    %c0_i32_1 = arith.constant 0 : i32
    return %arg0, %c0_i32, %c0_i32_0 : i32, i32, i32
  }
}

</mosaic_0001>

<bundles_post_ra>
// kernel: tpu_custom_call.1
= control target key start
LH: loop header
LB: loop body
LE: loop exit
PB: predicated region body
PF: predicated region fallthrough
CT: control target
= control target key end

     0   :  { %s941_s0 = inlined_call_operand.hbm [shape: f32[4,32], index: 0, kind: input, shape index: {}]   ;;  %s942_s1 = inlined_call_operand.hbm [shape: f32[2,8,32], index: 1, kind: input, shape index: {}]   ;;  %s943_s2 = inlined_call_operand.hbm [shape: f32[2,4,32], index: 2, kind: input, shape index: {}]   ;;  %s944_s3 = inlined_call_operand.hbm [shape: f32[2,1,4], index: 3, kind: output, shape index: {}]  }
   0x1   :  { %945 = sst [smem:[#allocation12_spill]] %s941_s0 }
   0x2   :  { %8 = vsyncpa [#allocation3], 0 }
   0x3   :  { %9 = vsyncpa [#allocation6], 0 }
   0x4   :  { %11 = vsyncpa [#allocation6 + $0x1], 0 }
   0x5   :  { %12 = vsyncpa [#allocation4], 0 }
   0x6   :  { %14 = vsyncpa [#allocation4 + $0x1], 0  ;;  %s762_s12 = smov 0   ;;  %s764_s13 = smov 0  }
   0x7   :  { %s766_s14 = smov 0   ;;  %s768_s15 = smov 0  }
   0x8 LB: > { %s783_s16 = sadd.s32 1, %s739_s15   ;;  %s48_s17 = sadd.s32 1, %s735_s14  ;;  %s739_s15 = sphi %s768_s15, %s956_s15   ;;  %s735_s14 = sphi %s766_s14, %s955_s14   ;;  %s731_s13 = sphi %s764_s13, %s954_s13   ;;  %s727_s12 = sphi %s762_s12, %s953_s12  }
   0x9   : > { %s45_s18 = ssub.s32 %s739_s15, %s783_s16  ;;  %p55_p0 = scmp.ne.s32.totalorder %s735_s14, %s731_s13 }
   0xa   : > { %p46_p1 = scmp.eq.s32.totalorder %s45_s18, 0  ;;  %p56_p2 = scmp.eq.s32.totalorder %s739_s15, 0 }
   0xb   : > { %p535_p4 = scmp.lt.s32.totalorder %s739_s15, 2  ;;  %s149_s20 = sand.u32 1, %s739_s15  }
   0xc   : > { %s794_s19 = scalar_select %p46_p1, %s735_s14, %s48_s17  }
   0xd   : > { %p57_p5 = por %p56_p2, %p55_p0  ;;  %s151_s21 = sand.u32 1, %s735_s14  }
   0xe   : > { %s494_s22 = sshll.u32 %s151_s21, 3  ;;  %s495_s23 = sshll.u32 %s739_s15, 3 }
   0xf   : > { %s157_s26 = scalar_lea.hbm %s942_s1, %s495_s23  ;;  %s153_s28 = scalar_lea.vmem [#allocation5], %s494_s22 }
  0x10   : > { %s159_s27 = sshll.u32 %s157_s26, 4  ;;  %s161_s29 = sshll.u32 %s153_s28, 4  ;;  %s160_s27 = int_to_ptr.hbm [resolvable:$true] %s159_s27  ;;  %s162_s29 = int_to_ptr.vmem [resolvable:$true] %s161_s29 }
  0x11   : > { %p807_p6 = pnand %p535_p4, %p57_p5  ;;  %s811_s4 = sshll.u32 %s151_s21, 2 }
  0x12   : > { %s814_s5 = sadd.s32 4294967295, %s739_s15   ;;  %s816_s6 = scalar_lea.sflag [#allocation6], %s149_s20 }
  0x13   : > { %s579_s7 = sshra.s32 %s160_s27, 4  ;;  %p583_p8 = pneg %p807_p6  ;;  %s580_s7 = int_to_ptr.hbm [resolvable:$true] %s579_s7 }
  0x14   : > { %s581_s8 = scalar_lea.hbm %s580_s7, 8  ;;  %s586_s11 = scalar_lea.hbm %s942_s1, 16 }
  0x15   : > { %p582_p7 = scmp.ne.s32.totalorder %s580_s7, %s581_s8  ;;  %p587_p11 = scmp.lt.s32.totalorder %s580_s7, %s942_s1 }
  0x16   : > { %p588_p12 = scmp.lt.s32.totalorder %s586_s11, %s581_s8 }
  0x17   : > { %p584_p9 = pnand %p583_p8, %p582_p7 }
  0x18   : > { %p589_p13 = por %p588_p12, %p587_p11 }
  0x19   : > { %p585_p10 = pneg %p584_p9 }
  0x1b   : > { %p590_p1 = pnand %p589_p13, %p585_p10 }
  0x1d   : > { %593 = shalt.err (!%p590_p1)
}
  0x1e   : > { %526 = dma.hbm_to_vmem [thread:$0]  (!%p807_p6), %s160_s27, 128, %s162_s29, %s816_s6  }
  0x1f   : > { %s490_s20 = sadd.s32 4294967294, %s739_s15   ;;  %p61_p2 = scmp.ne.s32.totalorder %s731_s13, %s727_s12 }
  0x20   : > { %p62_p4 = scmp.eq.s32.totalorder %s814_s5, 0  ;;  %p111_p5 = scmp.eq.s32.totalorder %s814_s5, 1 }
  0x21   : > { %p117_p7 = scmp.eq.s32.totalorder %s490_s20, 1  ;;  %p491_p9 = scmp.ge.s32.totalorder %s739_s15, 1 }
  0x22   : > { %p840_p10 = por %p62_p4, %p61_p2  ;;  %p847_p11 = por %p111_p5, %p55_p0 }
  0x23   : > { %p851_p12 = por %p117_p7, %p61_p2  ;;  %p124_p13 = scmp.lt.s32.totalorder %s739_s15, 3 }
  0x24   : > { %s950_s0 = sld [smem:[#allocation12_spill]]  ;;  %s741_s28 = smov [#allocation2]  }
  0x25   : > { %p859_p1 = pnand %p491_p9, %p124_p13  ;;  %s138_s29 = sshll.u32 %s741_s28, 4  ;;  %s139_s29 = int_to_ptr.vmem [resolvable:$true] %s138_s29 }
  0x26   : > { %s497_s7 = sshll.u32 %s739_s15, 2  ;;  %s172_s17 = scalar_lea.vmem [#allocation7], %s811_s4 }
  0x27   : > { %p519_p0 = pneg %p859_p1  ;;  %s176_s10 = scalar_lea.hbm %s943_s2, %s497_s7 }
  0x28   : > { %s178_s11 = sshll.u32 %s176_s10, 4  ;;  %s180_s18 = sshll.u32 %s172_s17, 4  ;;  %s179_s11 = int_to_ptr.hbm [resolvable:$true] %s178_s11  ;;  %s181_s18 = int_to_ptr.vmem [resolvable:$true] %s180_s18 }
  0x29   : > { %p520_p2 = pnand %p519_p0, %p62_p4  ;;  %s639_s20 = sshra.s32 %s179_s11, 4  ;;  %s640_s20 = int_to_ptr.hbm [resolvable:$true] %s639_s20 }
  0x2a   : > { %s136_s26 = sshll.u32 %s950_s0, 4  ;;  %s641_s24 = scalar_lea.hbm %s640_s20, 4  ;;  %s137_s26 = int_to_ptr.hbm [resolvable:$true] %s136_s26 }
  0x2b   : > { %522 = dma.hbm_to_vmem [thread:$0]  (!%p520_p2), %s137_s26, 64, %s139_s29, [#allocation3]  }
  0x2c   : > { %p642_p5 = scmp.ne.s32.totalorder %s640_s20, %s641_s24  ;;  %s646_s0 = scalar_lea.hbm %s943_s2, 8 }
  0x2d   : > { %p647_p13 = scmp.lt.s32.totalorder %s640_s20, %s943_s2  ;;  %p648_p0 = scmp.lt.s32.totalorder %s646_s0, %s641_s24 }
  0x2e   : > { %p644_p7 = pnand %p642_p5, %p583_p8 }
  0x2f   : > { %p649_p3 = por %p648_p0, %p647_p13 }
  0x30   : > { %p645_p9 = pneg %p644_p7 }
  0x32   : > { %p650_p2 = pnand %p649_p3, %p645_p9 }
  0x34   : > { %653 = shalt.err (!%p650_p2)
}
  0x35   : > { %529 = dma.hbm_to_vmem [thread:$0]  (!%p807_p6), %s179_s11, 64, %s181_s18, %s816_s6  }
  0x36   : > { %189 = sbr.rel (%p859_p1) target bundleno = 1107 (0x453), region = 32 }
  0x3b   : > { %714 = dma.done.wait (%p62_p4), [#allocation3], 64  }
  0x3c   : > { %716 = vsyncadd (%p62_p4), [#allocation3], 4294967232  ;;  %s196_s0 = sand.u32 1, %s814_s5   ;;  %s892_s4 = sand.u32 1, %s731_s13  }
  0x3d   : > { %s500_s26 = sshll.u32 %s892_s4, 3  ;;  %s197_s30 = scalar_lea.sflag [#allocation6], %s196_s0 }
  0x3e   : > { %s200_s29 = scalar_lea.vmem [#allocation5], %s500_s26 }
  0x3f   : > { %718 = dma.done.wait (%p840_p10), %s197_s30, 192  }
  0x40   : > { %720 = vsyncadd (%p840_p10), %s197_s30, 4294967104  ;;  %vm241_vm0 = vcmask 261120   ;;  %v239_v0 = vld [vmem:[%s200_s29] sm:$0xff]  ;;  %v238_v1 = vld [vmem:[#allocation2] sm:$0xf]  ;;  %vm268_vm1 = vcmask 60416   ;;  %v373_v44 = vlaneseq  ;;  %s388_s10 = scalar_lea.hbm %s944_s3, %s814_s5 }
  0x41   : > { %502 = vmatpush.xpose.msk.msra.mxu0 %vm241_vm0, %v239_v0  ;;  %312 = vmatpush.msra.mxu1 %v239_v0  ;;  %vm293_vm6 = vcmask 64512   ;;  %s501_s6 = sshll.u32 %s892_s4, 2  ;;  %vm343_vm7 = vcmask 27648   ;;  %s237_s11 = scalar_lea.vmem [#allocation8], %s892_s4  ;;  %vm377_vm12 = vcmask 24576  }
  0x42   : > { %s210_s21 = scalar_lea.vmem [#allocation7], %s501_s6  ;;  %v374_v45 = vand.u32 127, %v373_v44  ;;  %s390_s17 = sshll.u32 %s237_s11, 4  ;;  %s391_s17 = int_to_ptr.vmem [resolvable:$true] %s390_s17 }
  0x43   : > { %v240_v22 = vld [vmem:[%s210_s21] sm:$0xf]  ;;  %s392_s18 = sshll.u32 %s388_s10, 4  ;;  %s380_s20 = scalar_lea.sflag [#allocation4], %s892_s4  ;;  %s393_s18 = int_to_ptr.hbm [resolvable:$true] %s392_s18 }
  0x44   : > { %503 = vmatmul.msk.f32.vlgmr.msra.gmra.mxu0 %vm241_vm0, %v238_v1  ;;  %s683_s24 = sshra.s32 %s393_s18, 4  ;;  %s689_s8 = scalar_lea.hbm %s944_s3, 2  ;;  %s684_s24 = int_to_ptr.hbm [resolvable:$true] %s683_s24 }
  0x45   : > { %s685_s25 = scalar_lea.hbm %s684_s24, 1  ;;  %p690_p4 = scmp.lt.s32.totalorder %s684_s24, %s944_s3 }
  0x46   : > { %p686_p3 = scmp.ne.s32.totalorder %s684_s24, %s685_s25  ;;  %p691_p10 = scmp.lt.s32.totalorder %s689_s8, %s685_s25 }
  0x48   : > { %p687_p6 = pnand %p686_p3, %p847_p11  ;;  %p692_p1 = por %p691_p10, %p690_p4 }
  0x4a   : > { %p688_p8 = pneg %p687_p6 }
  0x4c   : > { %p693_p5 = pnand %p692_p1, %p688_p8 }
  0xc1   : > { %v265_v2 = vpop.f32.mrf.mxu0 }
  0xc2   : > { %v269_v3 = vsel %vm268_vm1, %v265_v2, -inf }
  0xc3   : > { %270 = vmax.xlane.f32.xlu0 %v269_v3 }
 0x136   : > { %v271_v4 = vpop.xlane.xlu0 %270 }
 0x137   : > { %v272_v5 = vsub.f32 %v265_v2, %v271_v4 }
 0x139   : > { %v273_v6 = vmul.f32 1.442695, %v272_v5 }
 0x13b   : > { %571 = vpow2.f32 %v273_v6 }
 0x141   : > { %v572_v7 = vpop.eup %571 }
 0x142   : > { %v275_v8 = vsel %vm268_vm1, %v572_v7, 0.0 }
 0x143   : > { %276 = vadd.xlane.f32.xlu0 %v275_v8 }
 0x1b6   : > { %v277_v9 = vpop.xlane.xlu0 %276 }
 0x1b7   : > { %573 = vrcp.f32 %v277_v9  ;;  %v289_v13 = vand.u32 2147483648, %v277_v9  ;;  %v287_v15 = vand.u32 2147483647, %v277_v9  ;;  %vm283_vm3 = vweird.f32 %v277_v9 }
 0x1b9   : > { %v290_v17 = vor.u32 1.1754944e-38, %v289_v13  ;;  %vm288_vm5 = vcmp.eq.f32.partialorder %v287_v15, 8.507059e+37 }
 0x1bd   : > { %v574_v10 = vpop.eup %573 }
 0x1be   : > { %v279_v11 = vmul.f32 %v574_v10, %v277_v9  ;;  %vm284_vm2 = vweird.f32 %v574_v10 }
 0x1bf   : > { %vm285_vm4 = vmor %vm283_vm3, %vm284_vm2 }
 0x1c0   : > { %v280_v12 = vsub.f32 1.0, %v279_v11 }
 0x1c2   : > { %v281_v14 = vmul.f32 %v574_v10, %v280_v12 }
 0x1c4   : > { %v282_v16 = vadd.f32 %v574_v10, %v281_v14 }
 0x1c6   : > { %v286_v18 = vsel %vm285_vm4, %v574_v10, %v282_v16 }
 0x1c7   : > { %v291_v19 = vsel %vm288_vm5, %v290_v17, %v286_v18 }
 0x1c8   : > { %v292_v20 = vmul.f32 %v572_v7, %v291_v19 }
 0x1ca   : > { %504 = vmatmul.msk.f32.vlgmr.msra.gmra.mxu1 %vm293_vm6, %v292_v20 }
 0x247   : > { %v314_v21 = vpop.f32.mrf.mxu1 }
 0x248   : > { %505 = vmatpush.xpose.msk.msra.mxu2 %vm241_vm0, %v314_v21 }
 0x24b   : > { %506 = vmatmul.msk.f32.vlgmr.msra.gmra.mxu2 %vm241_vm0, %v240_v22 }
 0x2ce   : > { %v340_v23 = vpop.f32.mrf.mxu2 }
 0x2cf   : > { %v344_v24 = vsel %vm343_vm7, %v340_v23, -inf }
 0x2d0   : > { %345 = vmax.xlane.f32.xlu1 %v344_v24 }
 0x343   : > { %v346_v25 = vpop.xlane.xlu1 %345 }
 0x344   : > { %v347_v26 = vsub.f32 %v340_v23, %v346_v25 }
 0x346   : > { %v348_v27 = vmul.f32 1.442695, %v347_v26 }
 0x348   : > { %575 = vpow2.f32 %v348_v27 }
 0x34e   : > { %v576_v28 = vpop.eup %575 }
 0x34f   : > { %v350_v29 = vsel %vm343_vm7, %v576_v28, 0.0 }
 0x350   : > { %351 = vadd.xlane.f32.xlu1 %v350_v29 }
 0x3c3   : > { %v352_v30 = vpop.xlane.xlu1 %351 }
 0x3c4   : > { %577 = vrcp.f32 %v352_v30  ;;  %v364_v34 = vand.u32 2147483648, %v352_v30  ;;  %v362_v36 = vand.u32 2147483647, %v352_v30  ;;  %vm358_vm9 = vweird.f32 %v352_v30 }
 0x3c6   : > { %v365_v38 = vor.u32 1.1754944e-38, %v364_v34  ;;  %vm363_vm11 = vcmp.eq.f32.partialorder %v362_v36, 8.507059e+37 }
 0x3ca   : > { %v578_v31 = vpop.eup %577 }
 0x3cb   : > { %v354_v32 = vmul.f32 %v578_v31, %v352_v30  ;;  %vm359_vm8 = vweird.f32 %v578_v31 }
 0x3cc   : > { %vm360_vm10 = vmor %vm358_vm9, %vm359_vm8 }
 0x3cd   : > { %v355_v33 = vsub.f32 1.0, %v354_v32 }
 0x3cf   : > { %v356_v35 = vmul.f32 %v578_v31, %v355_v33 }
 0x3d1   : > { %v357_v37 = vadd.f32 %v578_v31, %v356_v35 }
 0x3d3   : > { %v361_v39 = vsel %vm360_vm10, %v578_v31, %v357_v37 }
 0x3d4   : > { %v366_v40 = vsel %vm363_vm11, %v365_v38, %v361_v39 }
 0x3d5   : > { %v367_v41 = vmul.f32 %v576_v28, %v366_v40 }
 0x3d7   : > { %v368_v42 = vmul.f32 %v367_v41, %v340_v23 }
 0x3d9   : > { %v369_v43 = vsel %vm343_vm7, %v368_v42, 0.0 }
 0x3da   : > { %370 = vadd.xlane.f32.xlu2 %v369_v43 }
 0x44d   : > { %v371_v46 = vpop.xlane.xlu2 %370 }
 0x44e   : > { %v375_v47 = vperm.slane %v371_v46, %v374_v45 }
 0x450   : > { %378 = vst.msk [vmem:[%s237_s11] sm:$0x1] %vm377_vm12, %v375_v47 }
 0x451   : > { %696 = shalt.err (!%p693_p5)
}
 0x452   : > { %517 = dma.vmem_to_hbm [thread:$0]  (%p847_p11), %s391_s17, 16, %s393_s18, %s380_s20  }
 0x453 PF: > { %s404_s4 = sand.u32 1, %s727_s12   ;;  %p952_p7 = scmp.ge.s32.totalorder %s739_s15, 2 }
 0x454   : > { %s405_s26 = scalar_lea.sflag [#allocation4], %s404_s4 }
 0x455   : > { %p531_p9 = pnand %p952_p7, %p851_p12 }
 0x457   : > { %p532_p13 = pneg %p531_p9 }
 0x459   : > { %722 = dma.done.wait (%p532_p13), %s405_s26, 16  }
 0x45a   : > { %724 = vsyncadd (%p532_p13), %s405_s26, 4294967280  ;;  %p17_p0 = scmp.ge.s32.totalorder %s783_s16, 4   ;;  %s953_s12 = smov %s731_s13 }
 0x45b   : > { %s954_s13 = smov %s735_s14  ;;  %s955_s14 = smov %s794_s19 }
 0x45c   : > { %s956_s15 = smov %s783_s16  ;;  %19 = sbr.rel (!%p17_p0) target bundleno = 8 (0x8), region = 93 }
 0x461   :  { %410 = vsyncpa [#allocation3], 1 }
 0x462   :  { %412 = vsyncpa [#allocation3 + $0x1], 1 }
 0x463   :  { %413 = vsyncpa [#allocation6], 1 }
 0x464   :  { %415 = vsyncpa [#allocation6 + $0x1], 1 }
 0x465   :  { %416 = vsyncpa [#allocation4], 1 }
 0x466   :  { %418 = vsyncpa [#allocation4 + $0x1], 1 }

</bundles_post_ra>
